<compile_context>
chip_gen: v7x
topology: tpu7x:2x2x1
jax: 0.10.0
libtpu: 0.0.40
codegen_flags: <defaults>
</compile_context>

<pallas_src>
import functools

import jax
import jax.numpy as jnp
from jax.experimental import pallas as pl
from jax.experimental.pallas import tpu as pltpu


# ----------------------------- Fused Pallas kernel -------------------------- #

def _fused_forward_kernel(x_ref, w1_ref, p_ref, o_ref, *, meta):
    """Whole forward pass in VMEM.

    x_ref  : (N, sum(C_in))      concatenated position-0 slices of all branches
    w1_ref : (sum(C_in), F)      block-diagonal layer-1 weight
    p_ref  : (R, width)          packed buffer holding every other weight/bias
    o_ref  : (N, num_classes)
    """
    offsets = meta["offsets"]

    def sub(name):
        r, nr, nc = offsets[name]          # static Python ints -> cheap slices
        return p_ref[r:r + nr, 0:nc]

    def dot(a, b):
        return jnp.dot(a, b, preferred_element_type=jnp.float32)

    # Branch stack (all four branches fused via block-diagonal weights).
    h = jnp.maximum(dot(x_ref[...], w1_ref[...]) + sub("b1"), 0.0)
    h = jnp.maximum(dot(h, sub("w2")) + sub("b2"), 0.0)
    h = jnp.maximum(dot(h, sub("w3")) + sub("b3"), 0.0)
    # FC head: fc_1 -> ReLU -> fc_2 -> ReLU -> fc_3.
    h = jnp.maximum(dot(h, sub("fc1_w")) + sub("fc1_b"), 0.0)
    h = jnp.maximum(dot(h, sub("fc2_w")) + sub("fc2_b"), 0.0)
    o_ref[...] = dot(h, sub("fc3_w")) + sub("fc3_b")


# --------------------------- Parameter packing ------------------------------- #

_BRANCH_KEYS = ("conv_text", "conv_claim", "conv_title", "conv_content")


def pack_params(params):
    """Build block-diagonal branch weights and pack everything into 2 buffers.

    Called ONCE (outside jit).  Returns ({"w1": ..., "rest": ...}, meta) where
    meta holds only static Python ints (row offsets / widths).
    """
    c_ins = [params[k][0][0].shape[0] for k in _BRANCH_KEYS]
    c_outs = [params[k][0][0].shape[1] for k in _BRANCH_KEYS]
    k1, feat = sum(c_ins), sum(c_outs)

    w1 = jnp.zeros((k1, feat), jnp.float32)
    w2 = jnp.zeros((feat, feat), jnp.float32)
    w3 = jnp.zeros((feat, feat), jnp.float32)
    b1, b2, b3 = [], [], []
    ro = co = 0
    for k, ci, cf in zip(_BRANCH_KEYS, c_ins, c_outs):
        (bw1, bb1), (bw2, bb2), (bw3, bb3) = params[k]
        w1 = w1.at[ro:ro + ci, co:co + cf].set(bw1)
        w2 = w2.at[co:co + cf, co:co + cf].set(bw2)
        w3 = w3.at[co:co + cf, co:co + cf].set(bw3)
        b1.append(bb1); b2.append(bb2); b3.append(bb3)
        ro += ci
        co += cf
    b1 = jnp.concatenate(b1).reshape(1, -1)
    b2 = jnp.concatenate(b2).reshape(1, -1)
    b3 = jnp.concatenate(b3).reshape(1, -1)

    fc1_w, fc1_b = params["fc_1"]
    fc2_w, fc2_b = params["fc_2"]
    fc3_w, fc3_b = params["fc_3"]

    entries = [
        ("b1", b1), ("w2", w2), ("b2", b2), ("w3", w3), ("b3", b3),
        ("fc1_w", fc1_w), ("fc1_b", fc1_b.reshape(1, -1)),
        ("fc2_w", fc2_w), ("fc2_b", fc2_b.reshape(1, -1)),
        ("fc3_w", fc3_w), ("fc3_b", fc3_b.reshape(1, -1)),
    ]
    width = max(a.shape[1] for _, a in entries)

    rows, offsets, r = [], {}, 0
    for name, a in entries:
        nr, nc = a.shape
        offsets[name] = (r, nr, nc)
        pad_r = (-nr) % 8                      # keep row offsets sublane-aligned
        rows.append(jnp.pad(a.astype(jnp.float32),
                            ((0, pad_r), (0, width - nc))))
        r += nr + pad_r
    rest = jnp.concatenate(rows, axis=0)

    meta = {
        "feat": feat,
        "in_dims": tuple(c_ins),
        "num_classes": fc3_w.shape[1],
        "offsets": offsets,
    }
    return {"w1": w1, "rest": rest}, meta


# ----------------------------- Model wrapper -------------------------------- #

def _surviving_positions(length):
    """Input positions surviving Conv(s3)->Pool(s3)->Conv(s3)->Pool(s3)->Conv(s3),
    all with kernel_size=1 (pure subsampling)."""
    idx = list(range(length))
    for _ in range(5):
        idx = idx[::3]
    return idx


def text_article_forward(w1_packed, rest_packed, text, claim, title, content,
                         lang, *, meta):
    del lang  # accepted but unused, exactly as in the PyTorch forward

    cols = []
    for x in (text, claim, title, content):
        pos = _surviving_positions(x.shape[-1])
        # The module's FC head (and torch .squeeze()) requires each branch to
        # collapse to a single output position; longer inputs are invalid for
        # the original torch module as well (fc_1 in_features mismatch).
        assert len(pos) == 1, "conv branch does not reduce to a single position"
        cols.append(x[:, :, pos[0]])
    x_cat = jnp.concatenate(cols, axis=1)          # (N, sum(C_in)), lane-dense

    n = text.shape[0]
    num_classes = meta["num_classes"]

    vmem = pl.BlockSpec(memory_space=pltpu.MemorySpace.VMEM)
    return pl.pallas_call(
        functools.partial(_fused_forward_kernel, meta=meta),
        out_shape=jax.ShapeDtypeStruct((n, num_classes), jnp.float32),
        in_specs=[vmem, vmem, vmem],
        out_specs=vmem,
    )(x_cat, w1_packed, rest_packed)


# --------------------------- Pure-JAX reference ------------------------------ #
# Deliberately implements the literal stride chain and per-branch convs (no
# position-0 shortcut, no block-diagonal fusion) so it validates both
# algebraic rewrites used by the kernel.

def _ref_forward(params, text, claim, title, content, lang):
    del lang

    def pw(x, w, b):
        return jax.nn.relu(jnp.einsum("ncl,co->nol", x, w) + b[None, :, None])

    def branch(x, p):
        (w1, b1), (w2, b2), (w3, b3) = p
        h = pw(x[:, :, ::3], w1, b1)[:, :, ::3]
        h = pw(h[:, :, ::3], w2, b2)[:, :, ::3]
        h = pw(h[:, :, ::3], w3, b3)
        return h

    t = branch(text, params["conv_text"])
    c = branch(claim, params["conv_claim"])
    ti = branch(title, params["conv_title"])
    co = branch(content, params["conv_content"])
    fused = jnp.concatenate([t[..., 0], c[..., 0], ti[..., 0], co[..., 0]],
                            axis=1)
    (w1, b1), (w2, b2), (w3, b3) = (params["fc_1"], params["fc_2"],
                                    params["fc_3"])
    h = jax.nn.relu(fused @ w1 + b1)
    h = jax.nn.relu(h @ w2 + b2)
    return h @ w3 + b3


# ------------------------------ Init helpers --------------------------------- #

def _init_linear(key, fan_in, fan_out):
    k1, k2 = jax.random.split(key)
    bound = 1.0 / jnp.sqrt(jnp.float32(fan_in))
    w = jax.random.uniform(k1, (fan_in, fan_out), jnp.float32, -bound, bound)
    b = jax.random.uniform(k2, (fan_out,), jnp.float32, -bound, bound)
    return w, b


def _init_branch(key, c_in, c_out):
    k1, k2, k3 = jax.random.split(key, 3)
    return (_init_linear(k1, c_in, c_out),
            _init_linear(k2, c_out, c_out),
            _init_linear(k3, c_out, c_out))


# ---------------------------------- Main ------------------------------------- #

if __name__ == "__main__":
    # Module hyper-parameters (small, consistent with the PyTorch module).
    num_classes = 3
    text_dim, claim_dim = 32, 32
    conv_num, fc_num = 16, 32
    title_conv_num, content_conv_num = 8, 8
    N, L = 2, 27  # batch, sequence length (branch reduces to length 1 -> squeeze)

    key = jax.random.PRNGKey(0)
    (k_text, k_claim, k_title, k_content, k_fc1, k_fc2, k_fc3,
     kx1, kx2, kx3, kx4, kx5) = jax.random.split(key, 12)

    params = {
        "conv_text": _init_branch(k_text, text_dim, conv_num),
        "conv_claim": _init_branch(k_claim, claim_dim, conv_num),
        "conv_title": _init_branch(k_title, 768, title_conv_num),
        "conv_content": _init_branch(k_content, 768, content_conv_num),
        "fc_1": _init_linear(k_fc1, conv_num * 2 + title_conv_num
                             + content_conv_num, fc_num),
        "fc_2": _init_linear(k_fc2, fc_num, fc_num),
        "fc_3": _init_linear(k_fc3, fc_num, num_classes),
    }

    text = jax.random.normal(kx1, (N, text_dim, L), jnp.float32)
    claim = jax.random.normal(kx2, (N, claim_dim, L), jnp.float32)
    title = jax.random.normal(kx3, (N, 768, L), jnp.float32)
    content = jax.random.normal(kx4, (N, 768, L), jnp.float32)
    lang = jax.random.normal(kx5, (N, 46, L), jnp.float32)  # unused in forward

    # One-time packing (block-diagonal branch weights + 2 contiguous buffers).
    packed, meta = pack_params(params)
    fwd = jax.jit(functools.partial(text_article_forward, meta=meta))

    logits = fwd(packed["w1"], packed["rest"], text, claim, title, content,
                 lang)
    jax.block_until_ready(logits)

    ref = _ref_forward(params, text, claim, title, content, lang)
    assert logits.shape == (N, num_classes)
    assert jnp.allclose(logits, ref, atol=1e-4, rtol=1e-4), (
        f"max abs err {jnp.max(jnp.abs(logits - ref))}")

    print("KERNEL_OK")
</pallas_src>

<mosaic_0001>
module attributes {stable_mosaic.version = 11 : i64} {
  func.func @_fused_forward_kernel(%arg0: memref<2x1600xf32, #tpu.memory_space<vmem>>, %arg1: memref<1600x48xf32, #tpu.memory_space<vmem>>, %arg2: memref<256x48xf32, #tpu.memory_space<vmem>>, %arg3: memref<2x3xf32, #tpu.memory_space<vmem>>) attributes {dimension_semantics = [], scalar_prefetch = 0 : i64, scratch_operands = 0 : i64, tpu.core_type = #tpu.core_type<tc>} {
    %c0 = arith.constant 0 : index
    %c0_0 = arith.constant 0 : index
    %0 = vector.load %arg0[%c0, %c0_0] : memref<2x1600xf32, #tpu.memory_space<vmem>>, vector<2x1600xf32>
    %c0_1 = arith.constant 0 : index
    %c0_2 = arith.constant 0 : index
    %1 = vector.load %arg1[%c0_1, %c0_2] : memref<1600x48xf32, #tpu.memory_space<vmem>>, vector<1600x48xf32>
    %cst = arith.constant dense<0.000000e+00> : vector<2x48xf32>
    %2 = tpu.matmul %0, %1, %cst {dimension_numbers = #tpu.dot_dimension_numbers<[1], [0], [0], [1], [0, 0, 1, 1], [], []>} : vector<2x1600xf32>, vector<1600x48xf32>, vector<2x48xf32> -> vector<2x48xf32>
    %c0_3 = arith.constant 0 : index
    %c0_4 = arith.constant 0 : index
    %3 = vector.load %arg2[%c0_3, %c0_4] : memref<256x48xf32, #tpu.memory_space<vmem>>, vector<1x48xf32>
    %4 = vector.broadcast %3 : vector<1x48xf32> to vector<2x48xf32>
    %5 = arith.addf %2, %4 : vector<2x48xf32>
    %cst_5 = arith.constant 0.000000e+00 : f32
    %6 = vector.broadcast %cst_5 : f32 to vector<2x48xf32>
    %7 = arith.maximumf %5, %6 : vector<2x48xf32>
    %c8 = arith.constant 8 : index
    %c0_6 = arith.constant 0 : index
    %8 = vector.load %arg2[%c8, %c0_6] : memref<256x48xf32, #tpu.memory_space<vmem>>, vector<48x48xf32>
    %cst_7 = arith.constant dense<0.000000e+00> : vector<2x48xf32>
    %9 = tpu.matmul %7, %8, %cst_7 {dimension_numbers = #tpu.dot_dimension_numbers<[1], [0], [0], [1], [0, 0, 1, 1], [], []>} : vector<2x48xf32>, vector<48x48xf32>, vector<2x48xf32> -> vector<2x48xf32>
    %c56 = arith.constant 56 : index
    %c0_8 = arith.constant 0 : index
    %10 = vector.load %arg2[%c56, %c0_8] : memref<256x48xf32, #tpu.memory_space<vmem>>, vector<1x48xf32>
    %11 = vector.broadcast %10 : vector<1x48xf32> to vector<2x48xf32>
    %12 = arith.addf %9, %11 : vector<2x48xf32>
    %cst_9 = arith.constant 0.000000e+00 : f32
    %13 = vector.broadcast %cst_9 : f32 to vector<2x48xf32>
    %14 = arith.maximumf %12, %13 : vector<2x48xf32>
    %c64 = arith.constant 64 : index
    %c0_10 = arith.constant 0 : index
    %15 = vector.load %arg2[%c64, %c0_10] : memref<256x48xf32, #tpu.memory_space<vmem>>, vector<48x48xf32>
    %cst_11 = arith.constant dense<0.000000e+00> : vector<2x48xf32>
    %16 = tpu.matmul %14, %15, %cst_11 {dimension_numbers = #tpu.dot_dimension_numbers<[1], [0], [0], [1], [0, 0, 1, 1], [], []>} : vector<2x48xf32>, vector<48x48xf32>, vector<2x48xf32> -> vector<2x48xf32>
    %c112 = arith.constant 112 : index
    %c0_12 = arith.constant 0 : index
    %17 = vector.load %arg2[%c112, %c0_12] : memref<256x48xf32, #tpu.memory_space<vmem>>, vector<1x48xf32>
    %18 = vector.broadcast %17 : vector<1x48xf32> to vector<2x48xf32>
    %19 = arith.addf %16, %18 : vector<2x48xf32>
    %cst_13 = arith.constant 0.000000e+00 : f32
    %20 = vector.broadcast %cst_13 : f32 to vector<2x48xf32>
    %21 = arith.maximumf %19, %20 : vector<2x48xf32>
    %c120 = arith.constant 120 : index
    %c0_14 = arith.constant 0 : index
    %22 = vector.load %arg2[%c120, %c0_14] : memref<256x48xf32, #tpu.memory_space<vmem>>, vector<48x32xf32>
    %cst_15 = arith.constant dense<0.000000e+00> : vector<2x32xf32>
    %23 = tpu.matmul %21, %22, %cst_15 {dimension_numbers = #tpu.dot_dimension_numbers<[1], [0], [0], [1], [0, 0, 1, 1], [], []>} : vector<2x48xf32>, vector<48x32xf32>, vector<2x32xf32> -> vector<2x32xf32>
    %c168 = arith.constant 168 : index
    %c0_16 = arith.constant 0 : index
    %24 = vector.load %arg2[%c168, %c0_16] : memref<256x48xf32, #tpu.memory_space<vmem>>, vector<1x32xf32>
    %25 = vector.broadcast %24 : vector<1x32xf32> to vector<2x32xf32>
    %26 = arith.addf %23, %25 : vector<2x32xf32>
    %cst_17 = arith.constant 0.000000e+00 : f32
    %27 = vector.broadcast %cst_17 : f32 to vector<2x32xf32>
    %28 = arith.maximumf %26, %27 : vector<2x32xf32>
    %c176 = arith.constant 176 : index
    %c0_18 = arith.constant 0 : index
    %29 = vector.load %arg2[%c176, %c0_18] : memref<256x48xf32, #tpu.memory_space<vmem>>, vector<32x32xf32>
    %cst_19 = arith.constant dense<0.000000e+00> : vector<2x32xf32>
    %30 = tpu.matmul %28, %29, %cst_19 {dimension_numbers = #tpu.dot_dimension_numbers<[1], [0], [0], [1], [0, 0, 1, 1], [], []>} : vector<2x32xf32>, vector<32x32xf32>, vector<2x32xf32> -> vector<2x32xf32>
    %c208 = arith.constant 208 : index
    %c0_20 = arith.constant 0 : index
    %31 = vector.load %arg2[%c208, %c0_20] : memref<256x48xf32, #tpu.memory_space<vmem>>, vector<1x32xf32>
    %32 = vector.broadcast %31 : vector<1x32xf32> to vector<2x32xf32>
    %33 = arith.addf %30, %32 : vector<2x32xf32>
    %cst_21 = arith.constant 0.000000e+00 : f32
    %34 = vector.broadcast %cst_21 : f32 to vector<2x32xf32>
    %35 = arith.maximumf %33, %34 : vector<2x32xf32>
    %c216 = arith.constant 216 : index
    %c0_22 = arith.constant 0 : index
    %36 = vector.load %arg2[%c216, %c0_22] : memref<256x48xf32, #tpu.memory_space<vmem>>, vector<32x3xf32>
    %cst_23 = arith.constant dense<0.000000e+00> : vector<2x3xf32>
    %37 = tpu.matmul %35, %36, %cst_23 {dimension_numbers = #tpu.dot_dimension_numbers<[1], [0], [0], [1], [0, 0, 1, 1], [], []>} : vector<2x32xf32>, vector<32x3xf32>, vector<2x3xf32> -> vector<2x3xf32>
    %c248 = arith.constant 248 : index
    %c0_24 = arith.constant 0 : index
    %38 = vector.load %arg2[%c248, %c0_24] : memref<256x48xf32, #tpu.memory_space<vmem>>, vector<1x3xf32>
    %39 = vector.broadcast %38 : vector<1x3xf32> to vector<2x3xf32>
    %40 = arith.addf %37, %39 : vector<2x3xf32>
    %c0_25 = arith.constant 0 : index
    %c0_26 = arith.constant 0 : index
    %41 = vector.load %arg3[%c0_25, %c0_26] : memref<2x3xf32, #tpu.memory_space<vmem>>, vector<2x3xf32>
    tpu.vector_store %arg3[%c0_25, %c0_26], %40 {strides = array<i32>} : memref<2x3xf32, #tpu.memory_space<vmem>>, vector<2x3xf32>,
    return
  }
}

</mosaic_0001>

<bundles_post_ra>
// kernel: text_article_forward.1
= control target key start
LH: loop header
LB: loop body
LE: loop exit
PB: predicated region body
PF: predicated region fallthrough
CT: control target
= control target key end

     0   :  { %v1854_v43 = vmov 1983009808   ;;  %v232_v45 = vlaneseq  ;;  %s2659_s0 = inlined_call_operand.vmem [shape: f32[2,1600], index: 0, kind: input, shape index: {}]   ;;  %s2660_s1 = inlined_call_operand.vmem [shape: f32[1600,48], index: 1, kind: input, shape index: {}]   ;;  %s2661_s2 = inlined_call_operand.vmem [shape: f32[256,48], index: 2, kind: input, shape index: {}]   ;;  %s2662_s3 = inlined_call_operand.hbm [shape: f32[2,3], index: 3, kind: output, shape index: {}]  }
   0x1   :  { %v35_v0 = vld [vmem:[%s2660_s1 + $0x80] sm:$0xff]  ;;  %v36_v1 = vld [vmem:[%s2660_s1 + $0x88] sm:$0xff]  ;;  %v37_v11 = vld [vmem:[%s2660_s1 + $0x90] sm:$0xff]  ;;  %v230_v44 = vunpack.c.l.s4 %v1854_v43 }
   0x2   :  { %v19_v2 = vld [vmem:[%s2660_s1] sm:$0xff]  ;;  %v1579_v3 = vpack.c.bf16 %v36_v1, %v35_v0  ;;  %v20_v4 = vld [vmem:[%s2660_s1 + $0x8] sm:$0xff]  ;;  %v38_v13 = vld [vmem:[%s2660_s1 + $0x98] sm:$0xff]  ;;  %v233_v60 = vshrl.u32 %v232_v45, 7 }
   0x3   :  { %v67_v5 = vld [vmem:[%s2660_s1 + $0x180] sm:$0xff]  ;;  %v68_v6 = vld [vmem:[%s2660_s1 + $0x188] sm:$0xff]  ;;  %v1581_v7 = vpack.c.bf16 %v20_v4, %v19_v2  ;;  %v21_v14 = vld [vmem:[%s2660_s1 + $0x10] sm:$0xff]  ;;  %v1583_v16 = vpack.c.bf16 %v38_v13, %v37_v11  ;;  %v231_v59 = vunpack.c.0.s8 %v230_v44 }
   0x4   :  { %v1611_v8 = vpack.c.bf16 %v68_v6, %v67_v5  ;;  %v51_v9 = vld [vmem:[%s2660_s1 + $0x100] sm:$0xff]  ;;  %v52_v10 = vld [vmem:[%s2660_s1 + $0x108] sm:$0xff]  ;;  %1580 = vmatprep.subr.bf16.mxu0 %v1579_v3  ;;  %v22_v15 = vld [vmem:[%s2660_s1 + $0x18] sm:$0xff] }
   0x5   :  { %v1613_v12 = vpack.c.bf16 %v52_v10, %v51_v9  ;;  %1582 = vmatpush3.bf16.msra.mxu0 %v1581_v7  ;;  %v1585_v17 = vpack.c.bf16 %v22_v15, %v21_v14  ;;  %v69_v18 = vld [vmem:[%s2660_s1 + $0x190] sm:$0xff]  ;;  %v70_v19 = vld [vmem:[%s2660_s1 + $0x198] sm:$0xff]  ;;  %v39_v23 = vld [vmem:[%s2660_s1 + $0xa0] sm:$0xff]  ;;  %v2023_v10 = vsub.s32 %v231_v59, %v233_v60 }
   0x6   :  { %1612 = vmatprep.subr.bf16.mxu1 %v1611_v8  ;;  %v53_v20 = vld [vmem:[%s2660_s1 + $0x110] sm:$0xff]  ;;  %v1615_v21 = vpack.c.bf16 %v70_v19, %v69_v18  ;;  %v54_v22 = vld [vmem:[%s2660_s1 + $0x118] sm:$0xff]  ;;  %v40_v24 = vld [vmem:[%s2660_s1 + $0xa8] sm:$0xff]  ;;  %1584 = vmatprep.subr.bf16.mxu0 %v1583_v16 }
   0x7   :  { %1614 = vmatpush3.bf16.msra.mxu1 %v1613_v12  ;;  %v1617_v25 = vpack.c.bf16 %v54_v22, %v53_v20  ;;  %v1587_v26 = vpack.c.bf16 %v40_v24, %v39_v23  ;;  %v23_v27 = vld [vmem:[%s2660_s1 + $0x20] sm:$0xff]  ;;  %v24_v28 = vld [vmem:[%s2660_s1 + $0x28] sm:$0xff]  ;;  %v41_v35 = vld [vmem:[%s2660_s1 + $0xb0] sm:$0xff] }
   0x8   :  { %v71_v29 = vld [vmem:[%s2660_s1 + $0x1a0] sm:$0xff]  ;;  %1616 = vmatprep.subr.bf16.mxu1 %v1615_v21  ;;  %v72_v30 = vld [vmem:[%s2660_s1 + $0x1a8] sm:$0xff]  ;;  %v1589_v33 = vpack.c.bf16 %v24_v28, %v23_v27  ;;  %v42_v36 = vld [vmem:[%s2660_s1 + $0xb8] sm:$0xff] }
   0x9   :  { %v55_v31 = vld [vmem:[%s2660_s1 + $0x120] sm:$0xff]  ;;  %v56_v32 = vld [vmem:[%s2660_s1 + $0x128] sm:$0xff]  ;;  %1586 = vmatpush3.bf16.msra.mxu0 %v1585_v17  ;;  %v1619_v34 = vpack.c.bf16 %v72_v30, %v71_v29  ;;  %v25_v37 = vld [vmem:[%s2660_s1 + $0x30] sm:$0xff]  ;;  %v1591_v39 = vpack.c.bf16 %v42_v36, %v41_v35 }
   0xa   :  { %1588 = vmatprep.subr.bf16.mxu0 %v1587_v26  ;;  %v1621_v38 = vpack.c.bf16 %v56_v32, %v55_v31  ;;  %v26_v40 = vld [vmem:[%s2660_s1 + $0x38] sm:$0xff]  ;;  %v73_v41 = vld [vmem:[%s2660_s1 + $0x1b0] sm:$0xff]  ;;  %v43_v49 = vld [vmem:[%s2660_s1 + $0xc0] sm:$0xff] }
   0xb   :  { %1618 = vmatpush3.bf16.msra.mxu1 %v1617_v25  ;;  %v74_v42 = vld [vmem:[%s2660_s1 + $0x1b8] sm:$0xff]  ;;  %v57_v47 = vld [vmem:[%s2660_s1 + $0x130] sm:$0xff]  ;;  %v44_v50 = vld [vmem:[%s2660_s1 + $0xc8] sm:$0xff]  ;;  %v1593_v51 = vpack.c.bf16 %v26_v40, %v25_v37 }
   0xc   :  { %1620 = vmatprep.subr.bf16.mxu1 %v1619_v34  ;;  %v1623_v46 = vpack.c.bf16 %v74_v42, %v73_v41  ;;  %v58_v48 = vld [vmem:[%s2660_s1 + $0x138] sm:$0xff]  ;;  %v75_v52 = vld [vmem:[%s2660_s1 + $0x1c0] sm:$0xff]  ;;  %v76_v53 = vld [vmem:[%s2660_s1 + $0x1c8] sm:$0xff]  ;;  %v1595_v55 = vpack.c.bf16 %v44_v50, %v43_v49 }
   0xd   :  { %1590 = vmatpush3.bf16.msra.mxu0 %v1589_v33  ;;  %v1625_v54 = vpack.c.bf16 %v58_v48, %v57_v47  ;;  %v27_v56 = vld [vmem:[%s2660_s1 + $0x40] sm:$0xff]  ;;  %v28_v57 = vld [vmem:[%s2660_s1 + $0x48] sm:$0xff]  ;;  %v1627_v61 = vpack.c.bf16 %v76_v53, %v75_v52  ;;  %v45_v63 = vld [vmem:[%s2660_s1 + $0xd0] sm:$0xff] }
   0xe   :  { %1592 = vmatprep.subr.bf16.mxu0 %v1591_v39  ;;  %v59_v58 = vld [vmem:[%s2660_s1 + $0x140] sm:$0xff]  ;;  %v60_v62 = vld [vmem:[%s2660_s1 + $0x148] sm:$0xff]  ;;  %v46_v0 = vld [vmem:[%s2660_s1 + $0xd8] sm:$0xff]  ;;  %v1597_v3 = vpack.c.bf16 %v28_v57, %v27_v56 }
   0xf   :  { %1622 = vmatpush3.bf16.msra.mxu1 %v1621_v38  ;;  %v77_v1 = vld [vmem:[%s2660_s1 + $0x1d0] sm:$0xff]  ;;  %v78_v2 = vld [vmem:[%s2660_s1 + $0x1d8] sm:$0xff]  ;;  %v1629_v5 = vpack.c.bf16 %v60_v62, %v59_v58  ;;  %v1599_v6 = vpack.c.bf16 %v46_v0, %v45_v63  ;;  %v47_v12 = vld [vmem:[%s2660_s1 + $0xe0] sm:$0xff] }
  0x10   :  { %1624 = vmatprep.subr.bf16.mxu1 %v1623_v46  ;;  %v29_v4 = vld [vmem:[%s2660_s1 + $0x50] sm:$0xff]  ;;  %v30_v7 = vld [vmem:[%s2660_s1 + $0x58] sm:$0xff]  ;;  %v1631_v11 = vpack.c.bf16 %v78_v2, %v77_v1  ;;  %v48_v13 = vld [vmem:[%s2660_s1 + $0xe8] sm:$0xff] }
  0x11   :  { %1594 = vmatpush3.bf16.msra.mxu0 %v1593_v51  ;;  %v61_v8 = vld [vmem:[%s2660_s1 + $0x150] sm:$0xff]  ;;  %v62_v9 = vld [vmem:[%s2660_s1 + $0x158] sm:$0xff]  ;;  %v79_v14 = vld [vmem:[%s2660_s1 + $0x1e0] sm:$0xff]  ;;  %v1601_v16 = vpack.c.bf16 %v30_v7, %v29_v4  ;;  %v1603_v19 = vpack.c.bf16 %v48_v13, %v47_v12 }
  0x12   :  { %1596 = vmatprep.subr.bf16.mxu0 %v1595_v55  ;;  %v80_v15 = vld [vmem:[%s2660_s1 + $0x1e8] sm:$0xff]  ;;  %v1633_v17 = vpack.c.bf16 %v62_v9, %v61_v8  ;;  %v15_v18 = vld [vmem:[%s2659_s0] sm:$0xff]  ;;  %v49_v27 = vld [vmem:[%s2660_s1 + $0xf0] sm:$0xff] }
  0x13   :  { %1626 = vmatpush3.bf16.msra.mxu1 %v1625_v54  ;;  %v31_v20 = vld [vmem:[%s2660_s1 + $0x60] sm:$0xff]  ;;  %v32_v21 = vld [vmem:[%s2660_s1 + $0x68] sm:$0xff]  ;;  %v235_v23 = vrot.slane %v15_v18, %v2023_v10  ;;  %v228_v24 = vcombine.high %v15_v18, %v15_v18  ;;  %v1635_v25 = vpack.c.bf16 %v80_v15, %v79_v14  ;;  %v50_v28 = vld [vmem:[%s2660_s1 + $0xf8] sm:$0xff] }
  0x14   :  { %1628 = vmatprep.subr.bf16.mxu1 %v1627_v61  ;;  %v63_v22 = vld [vmem:[%s2660_s1 + $0x160] sm:$0xff]  ;;  %v64_v26 = vld [vmem:[%s2660_s1 + $0x168] sm:$0xff]  ;;  %v81_v29 = vld [vmem:[%s2660_s1 + $0x1f0] sm:$0xff]  ;;  %v1605_v33 = vpack.c.bf16 %v32_v21, %v31_v20  ;;  %v1607_v35 = vpack.c.bf16 %v50_v28, %v49_v27 }
  0x15   :  { %1598 = vmatpush3.bf16.msra.mxu0 %v1597_v3  ;;  %v82_v30 = vld [vmem:[%s2660_s1 + $0x1f8] sm:$0xff]  ;;  %v243_v31 = vcombine.high %v235_v23, %v235_v23  ;;  %v242_v32 = vrot.slane %v228_v24, %v2023_v10  ;;  %v1637_v34 = vpack.c.bf16 %v64_v26, %v63_v22  ;;  %v33_v36 = vld [vmem:[%s2660_s1 + $0x70] sm:$0xff]  ;;  %v99_v42 = vld [vmem:[%s2660_s1 + $0x280] sm:$0xff] }
  0x16   :  { %1600 = vmatprep.subr.bf16.mxu0 %v1599_v6  ;;  %v34_v37 = vld [vmem:[%s2660_s1 + $0x78] sm:$0xff]  ;;  %v65_v38 = vld [vmem:[%s2660_s1 + $0x170] sm:$0xff]  ;;  %v1639_v40 = vpack.c.bf16 %v82_v30, %v81_v29  ;;  %v100_v43 = vld [vmem:[%s2660_s1 + $0x288] sm:$0xff] }
  0x17   :  { %1630 = vmatpush3.bf16.msra.mxu1 %v1629_v5  ;;  %v244_v39 = vcombine.high %v242_v32, %v242_v32  ;;  %365 = vmatprep.mubr.f32.mxu0 %v243_v31  ;;  %v66_v41 = vld [vmem:[%s2660_s1 + $0x178] sm:$0xff]  ;;  %v131_v44 = vld [vmem:[%s2660_s1 + $0x380] sm:$0xff]  ;;  %v132_v45 = vld [vmem:[%s2660_s1 + $0x388] sm:$0xff]  ;;  %v1609_v46 = vpack.c.bf16 %v34_v37, %v33_v36  ;;  %v1643_v48 = vpack.c.bf16 %v100_v43, %v99_v42 }
  0x18   :  { %1632 = vmatprep.subr.bf16.mxu1 %v1631_v11  ;;  %v1641_v47 = vpack.c.bf16 %v66_v41, %v65_v38  ;;  %v83_v49 = vld [vmem:[%s2660_s1 + $0x200] sm:$0xff]  ;;  %v84_v50 = vld [vmem:[%s2660_s1 + $0x208] sm:$0xff]  ;;  %v1675_v52 = vpack.c.bf16 %v132_v45, %v131_v44  ;;  %v101_v54 = vld [vmem:[%s2660_s1 + $0x290] sm:$0xff] }
  0x19   :  { %1602 = vmatpush3.bf16.msra.mxu0 %v1601_v16  ;;  %435 = vmatprep.mubr.f32.mxu1 %v244_v39  ;;  %v115_v51 = vld [vmem:[%s2660_s1 + $0x300] sm:$0xff]  ;;  %v116_v53 = vld [vmem:[%s2660_s1 + $0x308] sm:$0xff]  ;;  %v102_v55 = vld [vmem:[%s2660_s1 + $0x298] sm:$0xff]  ;;  %v1645_v58 = vpack.c.bf16 %v84_v50, %v83_v49 }
  0x1a   :  { %1604 = vmatprep.subr.bf16.mxu0 %v1603_v19  ;;  %v133_v56 = vld [vmem:[%s2660_s1 + $0x390] sm:$0xff]  ;;  %v134_v57 = vld [vmem:[%s2660_s1 + $0x398] sm:$0xff]  ;;  %v1677_v59 = vpack.c.bf16 %v116_v53, %v115_v51  ;;  %v1647_v60 = vpack.c.bf16 %v102_v55, %v101_v54  ;;  %v103_v2 = vld [vmem:[%s2660_s1 + $0x2a0] sm:$0xff] }
  0x1b   :  { %1634 = vmatpush3.bf16.msra.mxu1 %v1633_v17  ;;  %v85_v61 = vld [vmem:[%s2660_s1 + $0x210] sm:$0xff]  ;;  %v86_v62 = vld [vmem:[%s2660_s1 + $0x218] sm:$0xff]  ;;  %v1679_v0 = vpack.c.bf16 %v134_v57, %v133_v56  ;;  %v104_v3 = vld [vmem:[%s2660_s1 + $0x2a8] sm:$0xff] }
  0x1c   :  { %1636 = vmatprep.subr.bf16.mxu1 %v1635_v25  ;;  %v117_v63 = vld [vmem:[%s2660_s1 + $0x310] sm:$0xff]  ;;  %v118_v1 = vld [vmem:[%s2660_s1 + $0x318] sm:$0xff]  ;;  %v135_v4 = vld [vmem:[%s2660_s1 + $0x3a0] sm:$0xff]  ;;  %v1649_v6 = vpack.c.bf16 %v86_v62, %v85_v61  ;;  %v1651_v8 = vpack.c.bf16 %v104_v3, %v103_v2 }
  0x1d   :  { %1606 = vmatpush3.bf16.msra.mxu0 %v1605_v33  ;;  %v136_v5 = vld [vmem:[%s2660_s1 + $0x3a8] sm:$0xff]  ;;  %v1681_v7 = vpack.c.bf16 %v118_v1, %v117_v63  ;;  %v87_v9 = vld [vmem:[%s2660_s1 + $0x220] sm:$0xff]  ;;  %v105_v15 = vld [vmem:[%s2660_s1 + $0x2b0] sm:$0xff] }
  0x1e   :  { %1608 = vmatprep.subr.bf16.mxu0 %v1607_v35  ;;  %v88_v11 = vld [vmem:[%s2660_s1 + $0x228] sm:$0xff]  ;;  %v119_v12 = vld [vmem:[%s2660_s1 + $0x320] sm:$0xff]  ;;  %v1683_v13 = vpack.c.bf16 %v136_v5, %v135_v4  ;;  %v106_v16 = vld [vmem:[%s2660_s1 + $0x2b8] sm:$0xff] }
  0x1f   :  { %1638 = vmatpush3.bf16.msra.mxu1 %v1637_v34  ;;  %v120_v14 = vld [vmem:[%s2660_s1 + $0x328] sm:$0xff]  ;;  %v137_v17 = vld [vmem:[%s2660_s1 + $0x3b0] sm:$0xff]  ;;  %v138_v18 = vld [vmem:[%s2660_s1 + $0x3b8] sm:$0xff]  ;;  %v1653_v19 = vpack.c.bf16 %v88_v11, %v87_v9  ;;  %v1655_v22 = vpack.c.bf16 %v106_v16, %v105_v15 }
  0x20   :  { %1640 = vmatprep.subr.bf16.mxu1 %v1639_v40  ;;  %v89_v20 = vld [vmem:[%s2660_s1 + $0x230] sm:$0xff]  ;;  %v1685_v21 = vpack.c.bf16 %v120_v14, %v119_v12  ;;  %v122_v25 = vld [vmem:[%s2660_s1 + $0x338] sm:$0xff]  ;;  %v1687_v26 = vpack.c.bf16 %v138_v18, %v137_v17  ;;  %v107_v27 = vld [vmem:[%s2660_s1 + $0x2c0] sm:$0xff] }
  0x21   :  { %1610 = vmatpush3.bf16.msra.mxu0 %v1609_v46  ;;  %v121_v24 = vld [vmem:[%s2660_s1 + $0x330] sm:$0xff]  ;;  %v108_v28 = vld [vmem:[%s2660_s1 + $0x2c8] sm:$0xff]  ;;  %v139_v30 = vld [vmem:[%s2660_s1 + $0x3c0] sm:$0xff] }
  0x22   :  { %1644 = vmatprep.subr.bf16.mxu0 %v1643_v48  ;;  %v16_v29 = vld [vmem:[%s2659_s0 + $0x8] sm:$0xff]  ;;  %v1689_v35 = vpack.c.bf16 %v122_v25, %v121_v24  ;;  %v1659_v36 = vpack.c.bf16 %v108_v28, %v107_v27  ;;  %v91_v37 = vld [vmem:[%s2660_s1 + $0x240] sm:$0xff]  ;;  %v109_v44 = vld [vmem:[%s2660_s1 + $0x2d0] sm:$0xff] }
  0x23   :  { %1642 = vmatpush3.bf16.msra.mxu1 %v1641_v47  ;;  %v140_v31 = vld [vmem:[%s2660_s1 + $0x3c8] sm:$0xff]  ;;  %v245_v33 = vcombine.high %v16_v29, %v16_v29  ;;  %v123_v39 = vld [vmem:[%s2660_s1 + $0x340] sm:$0xff]  ;;  %v110_v45 = vld [vmem:[%s2660_s1 + $0x2d8] sm:$0xff] }
  0x24   :  { %1676 = vmatprep.subr.bf16.mxu1 %v1675_v52  ;;  %366 = vmatmul.mubr.f32.vlgmr.msra.gmra.mrb[0].mxu0 %v235_v23  ;;  %v90_v23 = vld [vmem:[%s2660_s1 + $0x238] sm:$0xff]  ;;  %v92_v38 = vld [vmem:[%s2660_s1 + $0x248] sm:$0xff]  ;;  %v1691_v42 = vpack.c.bf16 %v140_v31, %v139_v30  ;;  %v141_v46 = vld [vmem:[%s2660_s1 + $0x3d0] sm:$0xff]  ;;  %v1663_v51 = vpack.c.bf16 %v110_v45, %v109_v44 }
  0x25   :  { %1646 = vmatpush3.bf16.msra.mxu0 %v1645_v58  ;;  %v1657_v34 = vpack.c.bf16 %v90_v23, %v89_v20  ;;  %v2204_v41 = vrot.slane %v245_v33, %v2023_v10  ;;  %v124_v43 = vld [vmem:[%s2660_s1 + $0x348] sm:$0xff]  ;;  %v142_v47 = vld [vmem:[%s2660_s1 + $0x3d8] sm:$0xff]  ;;  %v1661_v49 = vpack.c.bf16 %v92_v38, %v91_v37  ;;  %v93_v52 = vld [vmem:[%s2660_s1 + $0x250] sm:$0xff] }
  0x26   :  { %436 = vmatmul.mubr.f32.vlgmr.msra.gmra.mrb[0].mxu1 %v242_v32  ;;  %1648 = vmatprep.subr.bf16.mxu0 %v1647_v60  ;;  %v2190_v32 = vrot.slane %v16_v29, %v2023_v10  ;;  %v1693_v50 = vpack.c.bf16 %v124_v43, %v123_v39  ;;  %v94_v53 = vld [vmem:[%s2660_s1 + $0x258] sm:$0xff]  ;;  %v125_v54 = vld [vmem:[%s2660_s1 + $0x350] sm:$0xff]  ;;  %v1695_v55 = vpack.c.bf16 %v142_v47, %v141_v46  ;;  %v111_v57 = vld [vmem:[%s2660_s1 + $0x2e0] sm:$0xff] }
  0x27   :  { %1678 = vmatpush3.bf16.msra.mxu1 %v1677_v59  ;;  %v261_v48 = vcombine.high %v2204_v41, %v2204_v41  ;;  %v126_v56 = vld [vmem:[%s2660_s1 + $0x358] sm:$0xff]  ;;  %v112_v58 = vld [vmem:[%s2660_s1 + $0x2e8] sm:$0xff]  ;;  %v143_v59 = vld [vmem:[%s2660_s1 + $0x3e0] sm:$0xff]  ;;  %v1665_v61 = vpack.c.bf16 %v94_v53, %v93_v52 }
  0x28   :  { %1680 = vmatprep.subr.bf16.mxu1 %v1679_v0  ;;  %v260_v40 = vcombine.high %v2190_v32, %v2190_v32  ;;  %v144_v60 = vld [vmem:[%s2660_s1 + $0x3e8] sm:$0xff]  ;;  %v1697_v62 = vpack.c.bf16 %v126_v56, %v125_v54  ;;  %v1667_v63 = vpack.c.bf16 %v112_v58, %v111_v57  ;;  %v95_v0 = vld [vmem:[%s2660_s1 + $0x260] sm:$0xff]  ;;  %v113_v5 = vld [vmem:[%s2660_s1 + $0x2f0] sm:$0xff] }
  0x29   :  { %1650 = vmatpush3.bf16.msra.mxu0 %v1649_v6  ;;  %575 = vmatprep.mubr.f32.mxu1 %v261_v48  ;;  %v96_v1 = vld [vmem:[%s2660_s1 + $0x268] sm:$0xff]  ;;  %v127_v2 = vld [vmem:[%s2660_s1 + $0x360] sm:$0xff]  ;;  %v1699_v3 = vpack.c.bf16 %v144_v60, %v143_v59  ;;  %v114_v6 = vld [vmem:[%s2660_s1 + $0x2f8] sm:$0xff] }
  0x2a   :  { %1652 = vmatprep.subr.bf16.mxu0 %v1651_v8  ;;  %505 = vmatprep.mubr.f32.mxu0 %v260_v40  ;;  %v128_v4 = vld [vmem:[%s2660_s1 + $0x368] sm:$0xff]  ;;  %v146_v8 = vld [vmem:[%s2660_s1 + $0x3f8] sm:$0xff]  ;;  %v1669_v9 = vpack.c.bf16 %v96_v1, %v95_v0  ;;  %v1671_v12 = vpack.c.bf16 %v114_v6, %v113_v5  ;;  %v129_v15 = vld [vmem:[%s2660_s1 + $0x370] sm:$0xff] }
  0x2b   :  { %1682 = vmatpush3.bf16.msra.mxu1 %v1681_v7  ;;  %v145_v7 = vld [vmem:[%s2660_s1 + $0x3f0] sm:$0xff]  ;;  %v1701_v11 = vpack.c.bf16 %v128_v4, %v127_v2  ;;  %v98_v14 = vld [vmem:[%s2660_s1 + $0x278] sm:$0xff]  ;;  %v163_v18 = vld [vmem:[%s2660_s1 + $0x480] sm:$0xff] }
  0x2c   :  { %1684 = vmatprep.subr.bf16.mxu1 %v1683_v13  ;;  %v97_v13 = vld [vmem:[%s2660_s1 + $0x270] sm:$0xff]  ;;  %v1703_v16 = vpack.c.bf16 %v146_v8, %v145_v7  ;;  %v130_v17 = vld [vmem:[%s2660_s1 + $0x378] sm:$0xff]  ;;  %v195_v20 = vld [vmem:[%s2660_s1 + $0x580] sm:$0xff] }
  0x2d   :  { %1654 = vmatpush3.bf16.msra.mxu0 %v1653_v19  ;;  %v164_v19 = vld [vmem:[%s2660_s1 + $0x488] sm:$0xff]  ;;  %v147_v23 = vld [vmem:[%s2660_s1 + $0x400] sm:$0xff]  ;;  %v1705_v24 = vpack.c.bf16 %v130_v17, %v129_v15  ;;  %v165_v30 = vld [vmem:[%s2660_s1 + $0x490] sm:$0xff] }
  0x2e   :  { %1656 = vmatprep.subr.bf16.mxu0 %v1655_v22  ;;  %v1673_v22 = vpack.c.bf16 %v98_v14, %v97_v13  ;;  %v1707_v25 = vpack.c.bf16 %v164_v19, %v163_v18  ;;  %v179_v27 = vld [vmem:[%s2660_s1 + $0x500] sm:$0xff]  ;;  %v180_v28 = vld [vmem:[%s2660_s1 + $0x508] sm:$0xff]  ;;  %v166_v31 = vld [vmem:[%s2660_s1 + $0x498] sm:$0xff] }
  0x2f   :  { %1686 = vmatpush3.bf16.msra.mxu1 %v1685_v21  ;;  %v196_v21 = vld [vmem:[%s2660_s1 + $0x588] sm:$0xff]  ;;  %v197_v33 = vld [vmem:[%s2660_s1 + $0x590] sm:$0xff]  ;;  %v1711_v38 = vpack.c.bf16 %v166_v31, %v165_v30  ;;  %v150_v40 = vld [vmem:[%s2660_s1 + $0x418] sm:$0xff] }
  0x30   :  { %1688 = vmatprep.subr.bf16.mxu1 %v1687_v26  ;;  %v148_v26 = vld [vmem:[%s2660_s1 + $0x408] sm:$0xff]  ;;  %v1739_v29 = vpack.c.bf16 %v196_v21, %v195_v20  ;;  %v17_v37 = vld [vmem:[%s2659_s0 + $0x10] sm:$0xff]  ;;  %v182_v46 = vld [vmem:[%s2660_s1 + $0x518] sm:$0xff] }
  0x31   :  { %1658 = vmatpush3.bf16.msra.mxu0 %v1657_v34  ;;  %v198_v34 = vld [vmem:[%s2660_s1 + $0x598] sm:$0xff]  ;;  %v149_v39 = vld [vmem:[%s2660_s1 + $0x410] sm:$0xff]  ;;  %v2332_v43 = vrot.slane %v17_v37, %v2023_v10  ;;  %v262_v44 = vcombine.high %v17_v37, %v17_v37  ;;  %v167_v47 = vld [vmem:[%s2660_s1 + $0x4a0] sm:$0xff] }
  0x32   :  { %1660 = vmatprep.subr.bf16.mxu0 %v1659_v36  ;;  %v1741_v36 = vpack.c.bf16 %v180_v28, %v179_v27  ;;  %v1743_v45 = vpack.c.bf16 %v198_v34, %v197_v33  ;;  %v168_v48 = vld [vmem:[%s2660_s1 + $0x4a8] sm:$0xff]  ;;  %v1713_v53 = vpack.c.bf16 %v150_v40, %v149_v39 }
  0x33   :  { %1690 = vmatpush3.bf16.msra.mxu1 %v1689_v35  ;;  %v1709_v35 = vpack.c.bf16 %v148_v26, %v147_v23  ;;  %v2353_v52 = vrot.slane %v262_v44, %v2023_v10 }
  0x34   :  { %1692 = vmatprep.subr.bf16.mxu1 %v1691_v42  ;;  %v181_v42 = vld [vmem:[%s2660_s1 + $0x510] sm:$0xff] }
  0x35   :  { %1662 = vmatpush3.bf16.msra.mxu0 %v1661_v49  ;;  %v199_v49 = vld [vmem:[%s2660_s1 + $0x5a0] sm:$0xff] }
  0x36   :  { %1664 = vmatprep.subr.bf16.mxu0 %v1663_v51  ;;  %v277_v51 = vcombine.high %v2332_v43, %v2332_v43 }
  0x37   :  { %1694 = vmatpush3.bf16.msra.mxu1 %v1693_v50  ;;  %v200_v50 = vld [vmem:[%s2660_s1 + $0x5a8] sm:$0xff] }
  0x38   :  { %1696 = vmatprep.subr.bf16.mxu1 %v1695_v55 }
  0x39   :  { %1666 = vmatpush3.bf16.msra.mxu0 %v1665_v61 }
  0x3a   :  { %1668 = vmatprep.subr.bf16.mxu0 %v1667_v63 }
  0x3b   :  { %1698 = vmatpush3.bf16.msra.mxu1 %v1697_v62 }
  0x3c   :  { %1700 = vmatprep.subr.bf16.mxu1 %v1699_v3 }
  0x3d   :  { %1670 = vmatpush3.bf16.msra.mxu0 %v1669_v9 }
  0x3e   :  { %1672 = vmatprep.subr.bf16.mxu0 %v1671_v12 }
  0x3f   :  { %1702 = vmatpush3.bf16.msra.mxu1 %v1701_v11 }
  0x40   :  { %1704 = vmatprep.subr.bf16.mxu1 %v1703_v16 }
  0x41   :  { %1674 = vmatpush3.bf16.msra.mxu0 %v1673_v22 }
  0x42   :  { %1708 = vmatprep.subr.bf16.mxu0 %v1707_v25 }
  0x43   :  { %1706 = vmatpush3.bf16.msra.mxu1 %v1705_v24 }
  0x44   :  { %1740 = vmatprep.subr.bf16.mxu1 %v1739_v29  ;;  %506 = vmatmul.mubr.f32.vlgmr.msra.gmra.mrb[2].mxu0 %v2190_v32 }
  0x45   :  { %1710 = vmatpush3.bf16.msra.mxu0 %v1709_v35 }
  0x46   :  { %576 = vmatmul.mubr.f32.vlgmr.msra.gmra.mrb[2].mxu1 %v2204_v41 }
  0x47   :  { %8 = vsyncpa [#allocation3], 0  ;;  %1742 = vmatpush3.bf16.msra.mxu1 %v1741_v36  ;;  %1712 = vmatprep.subr.bf16.mxu0 %v1711_v38  ;;  %v1745_v32 = vpack.c.bf16 %v182_v46, %v181_v42  ;;  %v1715_v54 = vpack.c.bf16 %v168_v48, %v167_v47  ;;  %v151_v55 = vld [vmem:[%s2660_s1 + $0x420] sm:$0xff]  ;;  %v152_v56 = vld [vmem:[%s2660_s1 + $0x428] sm:$0xff]  ;;  %v278_v41 = vcombine.high %v2353_v52, %v2353_v52  ;;  %vm1856_vm0 = vmmov 0  }
  0x48   :  { %v183_v10 = vld [vmem:[%s2660_s1 + $0x520] sm:$0xff]  ;;  %1744 = vmatprep.subr.bf16.mxu1 %v1743_v45  ;;  %v1747_v57 = vpack.c.bf16 %v200_v50, %v199_v49  ;;  %v184_v58 = vld [vmem:[%s2660_s1 + $0x528] sm:$0xff]  ;;  %v169_v59 = vld [vmem:[%s2660_s1 + $0x4b0] sm:$0xff]  ;;  %645 = vmatprep.mubr.f32.mxu0 %v277_v51  ;;  %v1717_v63 = vpack.c.bf16 %v152_v56, %v151_v55  ;;  %vm298_vm1 = vcmask 523264   ;;  %vm803_vm2 = vcmask 392192  }
  0x49   :  { %v170_v60 = vld [vmem:[%s2660_s1 + $0x4b8] sm:$0xff]  ;;  %v201_v61 = vld [vmem:[%s2660_s1 + $0x5b0] sm:$0xff]  ;;  %715 = vmatprep.mubr.f32.mxu1 %v278_v41  ;;  %1714 = vmatpush3.bf16.msra.mxu0 %v1713_v53  ;;  %v1749_v0 = vpack.c.bf16 %v184_v58, %v183_v10  ;;  %v171_v7 = vld [vmem:[%s2660_s1 + $0x4c0] sm:$0xff]  ;;  %vm1057_vm3 = vcmask 261120   ;;  %vm1214_vm4 = vcmask 17408  }
  0x4a   :  { %v202_v62 = vld [vmem:[%s2660_s1 + $0x5b8] sm:$0xff]  ;;  %1716 = vmatprep.subr.bf16.mxu0 %v1715_v54  ;;  %v1719_v1 = vpack.c.bf16 %v170_v60, %v169_v59  ;;  %v153_v2 = vld [vmem:[%s2660_s1 + $0x430] sm:$0xff]  ;;  %v172_v8 = vld [vmem:[%s2660_s1 + $0x4c8] sm:$0xff] }
  0x4b   :  { %1746 = vmatpush3.bf16.msra.mxu1 %v1745_v32  ;;  %v154_v3 = vld [vmem:[%s2660_s1 + $0x438] sm:$0xff]  ;;  %v185_v4 = vld [vmem:[%s2660_s1 + $0x530] sm:$0xff]  ;;  %v1751_v5 = vpack.c.bf16 %v202_v62, %v201_v61  ;;  %v203_v9 = vld [vmem:[%s2660_s1 + $0x5c0] sm:$0xff]  ;;  %v1723_v14 = vpack.c.bf16 %v172_v8, %v171_v7  ;;  %v1855_v62 = vmov 0.0|0.0  }
  0x4c   :  { %1748 = vmatprep.subr.bf16.mxu1 %v1747_v57  ;;  %v186_v6 = vld [vmem:[%s2660_s1 + $0x538] sm:$0xff]  ;;  %v204_v11 = vld [vmem:[%s2660_s1 + $0x5c8] sm:$0xff]  ;;  %v1721_v12 = vpack.c.bf16 %v154_v3, %v153_v2  ;;  %v155_v15 = vld [vmem:[%s2660_s1 + $0x440] sm:$0xff] }
  0x4d   :  { %1718 = vmatpush3.bf16.msra.mxu0 %v1717_v63  ;;  %v1753_v13 = vpack.c.bf16 %v186_v6, %v185_v4  ;;  %v156_v16 = vld [vmem:[%s2660_s1 + $0x448] sm:$0xff]  ;;  %v187_v17 = vld [vmem:[%s2660_s1 + $0x540] sm:$0xff]  ;;  %v1755_v18 = vpack.c.bf16 %v204_v11, %v203_v9  ;;  %v173_v20 = vld [vmem:[%s2660_s1 + $0x4d0] sm:$0xff]  ;;  %v1857_v4 = vmov 0.0  }
  0x4e   :  { %1720 = vmatprep.subr.bf16.mxu0 %v1719_v1  ;;  %v188_v19 = vld [vmem:[%s2660_s1 + $0x548] sm:$0xff]  ;;  %v174_v21 = vld [vmem:[%s2660_s1 + $0x4d8] sm:$0xff]  ;;  %v205_v22 = vld [vmem:[%s2660_s1 + $0x5d0] sm:$0xff]  ;;  %v1725_v24 = vpack.c.bf16 %v156_v16, %v155_v15 }
  0x4f   :  { %1750 = vmatpush3.bf16.msra.mxu1 %v1749_v0  ;;  %v206_v23 = vld [vmem:[%s2660_s1 + $0x5d8] sm:$0xff]  ;;  %v1757_v25 = vpack.c.bf16 %v188_v19, %v187_v17  ;;  %v1727_v26 = vpack.c.bf16 %v174_v21, %v173_v20  ;;  %v157_v27 = vld [vmem:[%s2660_s1 + $0x450] sm:$0xff]  ;;  %v175_v33 = vld [vmem:[%s2660_s1 + $0x4e0] sm:$0xff] }
  0x50   :  { %1752 = vmatprep.subr.bf16.mxu1 %v1751_v5  ;;  %v158_v28 = vld [vmem:[%s2660_s1 + $0x458] sm:$0xff]  ;;  %v189_v29 = vld [vmem:[%s2660_s1 + $0x550] sm:$0xff]  ;;  %v1759_v30 = vpack.c.bf16 %v206_v23, %v205_v22  ;;  %v176_v34 = vld [vmem:[%s2660_s1 + $0x4e8] sm:$0xff] }
  0x51   :  { %1722 = vmatpush3.bf16.msra.mxu0 %v1721_v12  ;;  %v190_v31 = vld [vmem:[%s2660_s1 + $0x558] sm:$0xff]  ;;  %v207_v35 = vld [vmem:[%s2660_s1 + $0x5e0] sm:$0xff]  ;;  %v208_v36 = vld [vmem:[%s2660_s1 + $0x5e8] sm:$0xff]  ;;  %v1729_v37 = vpack.c.bf16 %v158_v28, %v157_v27  ;;  %v1731_v39 = vpack.c.bf16 %v176_v34, %v175_v33 }
  0x52   :  { %1724 = vmatprep.subr.bf16.mxu0 %v1723_v14  ;;  %v1761_v38 = vpack.c.bf16 %v190_v31, %v189_v29  ;;  %v159_v40 = vld [vmem:[%s2660_s1 + $0x460] sm:$0xff]  ;;  %v160_v42 = vld [vmem:[%s2660_s1 + $0x468] sm:$0xff]  ;;  %v1763_v45 = vpack.c.bf16 %v208_v36, %v207_v35  ;;  %v177_v47 = vld [vmem:[%s2660_s1 + $0x4f0] sm:$0xff] }
  0x53   :  { %1754 = vmatpush3.bf16.msra.mxu1 %v1753_v13  ;;  %v191_v44 = vld [vmem:[%s2660_s1 + $0x560] sm:$0xff]  ;;  %v192_v46 = vld [vmem:[%s2660_s1 + $0x568] sm:$0xff]  ;;  %v178_v48 = vld [vmem:[%s2660_s1 + $0x4f8] sm:$0xff]  ;;  %v1733_v51 = vpack.c.bf16 %v160_v42, %v159_v40 }
  0x54   :  { %1756 = vmatprep.subr.bf16.mxu1 %v1755_v18  ;;  %v209_v49 = vld [vmem:[%s2660_s1 + $0x5f0] sm:$0xff]  ;;  %v210_v50 = vld [vmem:[%s2660_s1 + $0x5f8] sm:$0xff]  ;;  %v1765_v53 = vpack.c.bf16 %v192_v46, %v191_v44  ;;  %v1735_v32 = vpack.c.bf16 %v178_v48, %v177_v47  ;;  %v211_v59 = vld [vmem:[%s2660_s1 + $0x600] sm:$0xff] }
  0x55   :  { %1726 = vmatpush3.bf16.msra.mxu0 %v1725_v24  ;;  %v161_v54 = vld [vmem:[%s2660_s1 + $0x470] sm:$0xff]  ;;  %v162_v55 = vld [vmem:[%s2660_s1 + $0x478] sm:$0xff]  ;;  %v1767_v56 = vpack.c.bf16 %v210_v50, %v209_v49  ;;  %v212_v60 = vld [vmem:[%s2660_s1 + $0x608] sm:$0xff] }
  0x56   :  { %1728 = vmatprep.subr.bf16.mxu0 %v1727_v26  ;;  %v193_v10 = vld [vmem:[%s2660_s1 + $0x570] sm:$0xff]  ;;  %v194_v41 = vld [vmem:[%s2660_s1 + $0x578] sm:$0xff]  ;;  %v1737_v57 = vpack.c.bf16 %v162_v55, %v161_v54  ;;  %v1772_v61 = vpack.c.bf16 %v212_v60, %v211_v59  ;;  %v215_v2 = vld [vmem:[%s2660_s1 + $0x620] sm:$0xff] }
  0x57   :  { %1758 = vmatpush3.bf16.msra.mxu1 %v1757_v25  ;;  %v1769_v58 = vpack.c.bf16 %v194_v41, %v193_v10  ;;  %v213_v63 = vld [vmem:[%s2660_s1 + $0x610] sm:$0xff]  ;;  %v214_v0 = vld [vmem:[%s2660_s1 + $0x618] sm:$0xff]  ;;  %v216_v3 = vld [vmem:[%s2660_s1 + $0x628] sm:$0xff] }
  0x58   :  { %1760 = vmatprep.subr.bf16.mxu1 %v1759_v30  ;;  %v1775_v1 = vpack.c.bf16 %v214_v0, %v213_v63  ;;  %v218_v5 = vld [vmem:[%s2660_s1 + $0x638] sm:$0xff]  ;;  %v792_v8 = vld [vmem:[%s2661_s2 + $0x8] sm:$0xff]  ;;  %v793_v9 = vld [vmem:[%s2661_s2 + $0x10] sm:$0xff] }
  0x59   :  { %1730 = vmatpush3.bf16.msra.mxu0 %v1729_v37  ;;  %v1231_v7 = vld.sshfl [vmem:[%s2659_s0 + $0x18] sm:$0x3 pattern:$0x76325410]  ;;  %v1784_v12 = vpack.c.bf16 %v793_v9, %v792_v8  ;;  %v795_v13 = vld [vmem:[%s2661_s2 + $0x20] sm:$0xff]  ;;  %v796_v15 = vld [vmem:[%s2661_s2 + $0x28] sm:$0xff] }
  0x5a   :  { %1732 = vmatprep.subr.bf16.mxu0 %v1731_v39  ;;  %v794_v11 = vld [vmem:[%s2661_s2 + $0x18] sm:$0xff]  ;;  %v797_v16 = vld [vmem:[%s2661_s2 + $0x30] sm:$0xff]  ;;  %v1230_v19 = vld [vmem:[%s2661_s2] ss:$0 sm:$0xff]  ;;  %s1858_s0 = smov [#allocation2]  }
  0x5b   :  { %1762 = vmatpush3.bf16.msra.mxu1 %v1761_v38  ;;  %v1787_v14 = vpack.c.bf16 %v795_v13, %v794_v11  ;;  %v1790_v17 = vpack.c.bf16 %v797_v16, %v796_v15  ;;  %v878_v46 = vld [vmem:[%s2661_s2 + $0x40] sm:$0xff]  ;;  %v879_v47 = vld [vmem:[%s2661_s2 + $0x48] sm:$0xff]  ;;  %v881_v54 = vld [vmem:[%s2661_s2 + $0x58] sm:$0xff]  ;;  %s1222_s20 = sshll.u32 %s1858_s0, 4  ;;  %s1223_s20 = int_to_ptr.vmem [resolvable:$true] %s1222_s20 }
  0x5c   :  { %1764 = vmatprep.subr.bf16.mxu1 %v1763_v45  ;;  %v883_v10 = vld [vmem:[%s2661_s2 + $0x68] sm:$0xff]  ;;  %v1233_v0 = vld [vmem:[%s2661_s2 + $0x38] ss:$0 sm:$0xff]  ;;  %v1235_v11 = vld [vmem:[%s2661_s2 + $0x70] ss:$0 sm:$0xff]  ;;  %s1830_s21 = scalar_lea.vmem %s1223_s20, 32  ;;  %p1835_p1 = scmp.lt.s32.totalorder %s1223_s20, %s1223_s20 }
  0x5d   :  { %1734 = vmatpush3.bf16.msra.mxu0 %v1733_v51  ;;  %v1793_v51 = vpack.c.bf16 %v879_v47, %v878_v46  ;;  %v965_v59 = vld [vmem:[%s2661_s2 + $0x88] sm:$0xff]  ;;  %v1049_v8 = vld [vmem:[%s2661_s2 + $0xb8] sm:$0xff]  ;;  %v1050_v16 = vld [vmem:[%s2661_s2 + $0xc0] sm:$0xff]  ;;  %p1831_p0 = scmp.ne.s32.totalorder %s1223_s20, %s1830_s21  ;;  %p1836_p2 = scmp.lt.s32.totalorder %s1830_s21, %s1830_s21 }
  0x5e   :  { %1736 = vmatprep.subr.bf16.mxu0 %v1735_v32  ;;  %v880_v32 = vld [vmem:[%s2661_s2 + $0x50] sm:$0xff] }
  0x5f   :  { %1766 = vmatpush3.bf16.msra.mxu1 %v1765_v53  ;;  %v1796_v55 = vpack.c.bf16 %v881_v54, %v880_v32  ;;  %p1837_p3 = por %p1836_p2, %p1835_p1 }
  0x60   :  { %1768 = vmatprep.subr.bf16.mxu1 %v1767_v56  ;;  %v882_v56 = vld [vmem:[%s2661_s2 + $0x60] sm:$0xff] }
  0x61   :  { %1738 = vmatpush3.bf16.msra.mxu0 %v1737_v57  ;;  %v1799_v41 = vpack.c.bf16 %v883_v10, %v882_v56  ;;  %v963_v57 = vld [vmem:[%s2661_s2 + $0x78] sm:$0xff]  ;;  %p1838_p4 = pnand %p1837_p3, %p1831_p0 }
  0x62   :  { %1771 = vmatprep.subr.bf16.mxu0 %v1855_v62 }
  0x63   :  { %1770 = vmatpush3.bf16.msra.mxu1 %v1769_v58  ;;  %v964_v58 = vld [vmem:[%s2661_s2 + $0x80] sm:$0xff] }
  0x64   :  { %1783 = vmatprep.subr.bf16.mxu1 %v1855_v62  ;;  %646 = vmatmul.mubr.f32.vlgmr.msra.gmra.mrb[4].mxu0 %v2332_v43  ;;  %v1778_v43 = vpack.c.bf16 %v216_v3, %v215_v2  ;;  %v1802_v60 = vpack.c.bf16 %v964_v58, %v963_v57 }
  0x65   :  { %1773 = vmatpush3.bf16.msra.mxu0 %v1772_v61  ;;  %1509 = vmatprep.mubr.msk.f32.mxu0 %vm1856_vm0, %v1857_v4  ;;  %v966_v61 = vld [vmem:[%s2661_s2 + $0x90] sm:$0xff] }
  0x66   :  { %716 = vmatmul.mubr.f32.vlgmr.msra.gmra.mrb[4].mxu1 %v2353_v52  ;;  %1774 = vmatprep.subr.bf16.mxu0 %v1855_v62  ;;  %v217_v52 = vld [vmem:[%s2660_s1 + $0x630] sm:$0xff]  ;;  %v1805_v63 = vpack.c.bf16 %v966_v61, %v965_v59 }
  0x67   :  { %1524 = vmatprep.mubr.msk.f32.mxu1 %vm1856_vm0, %v1857_v4  ;;  %v1781_v6 = vpack.c.bf16 %v218_v5, %v217_v52  ;;  %1785 = vmatpush3.bf16.msra.mxu1 %v1784_v12  ;;  %v967_v52 = vld [vmem:[%s2661_s2 + $0x98] sm:$0xff]  ;;  %v968_v5 = vld [vmem:[%s2661_s2 + $0xa0] sm:$0xff] }
  0x68   :  { %1786 = vmatprep.subr.bf16.mxu1 %v1855_v62 }
  0x69   :  { %1776 = vmatpush3.bf16.msra.mxu0 %v1775_v1 }
  0x6a   :  { %1777 = vmatprep.subr.bf16.mxu0 %v1855_v62 }
  0x6b   :  { %1788 = vmatpush3.bf16.msra.mxu1 %v1787_v14 }
  0x6c   :  { %1789 = vmatprep.subr.bf16.mxu1 %v1855_v62 }
  0x6d   :  { %1779 = vmatpush3.bf16.msra.mxu0 %v1778_v43 }
  0x6e   :  { %1780 = vmatprep.subr.bf16.mxu0 %v1855_v62 }
  0x6f   :  { %1791 = vmatpush3.bf16.msra.mxu1 %v1790_v17  ;;  %v1051_v17 = vld [vmem:[%s2661_s2 + $0xc8] sm:$0xff] }
  0x70   :  { %1792 = vmatprep.subr.bf16.mxu1 %v1855_v62 }
  0x71   :  { %1782 = vmatpush3.bf16.msra.mxu0 %v1781_v6  ;;  %v1808_v6 = vpack.c.bf16 %v968_v5, %v967_v52 }
  0x72   :  { %1801 = vmatprep.subr.bf16.mxu0 %v1855_v62 }
  0x74   :  { %1510 = vmatmul.mubr.msk.f32.vlgmr.msra.gmra.mrb[6].mxu0 %vm298_vm1, %v1231_v7  ;;  %v1048_v7 = vld [vmem:[%s2661_s2 + $0xb0] sm:$0xff] }
  0x75   :  { %1554 = vmatprep.mubr.msk.f32.mxu0 %vm1856_vm0, %v1857_v4  ;;  %1803 = vmatpush3.bf16.msra.mxu0 %v1802_v60  ;;  %v1811_v9 = vpack.c.bf16 %v1049_v8, %v1048_v7 }
  0x76   :  { %1804 = vmatprep.subr.bf16.mxu0 %v1855_v62 }
  0x79   :  { %1806 = vmatpush3.bf16.msra.mxu0 %v1805_v63 }
  0x7a   :  { %1807 = vmatprep.subr.bf16.mxu0 %v1855_v62 }
  0x7d   :  { %1809 = vmatpush3.bf16.msra.mxu0 %v1808_v6 }
  0x7e   :  { %1816 = vmatprep.subr.bf16.mxu0 %v1855_v62 }
  0xf7   :  { %v1275_v18 = vpop.f32.mrb[0].mxu0 }
  0xf8   :  { %v1276_v20 = vpop.f32.mrb[1].mxu0 }
  0xf9   :  { %v1310_v21 = vpop.f32.mrb[0].mxu1  ;;  %v1277_v22 = vadd.f32 %v1276_v20, %v1275_v18  ;;  %v1814_v18 = vpack.c.bf16 %v1051_v17, %v1050_v16  ;;  %v1133_v20 = vld [vmem:[%s2661_s2 + $0xe0] sm:$0xff] }
  0xfa   :  { %v1311_v23 = vpop.f32.mrb[1].mxu1 }
  0xfb   :  { %v1312_v24 = vadd.f32 %v1311_v23, %v1310_v21  ;;  %v368_v25 = vadd.f32 %v1277_v22, %v1230_v19  ;;  %v1132_v19 = vld [vmem:[%s2661_s2 + $0xd8] sm:$0xff] }
  0xfc   :  { %v1817_v21 = vpack.c.bf16 %v1133_v20, %v1132_v19 }
  0xfd   :  { %v438_v26 = vadd.f32 %v1312_v24, %v368_v25 }
 0x117   :  { %v1345_v27 = vpop.f32.mrb[2].mxu0 }
 0x118   :  { %v1346_v28 = vpop.f32.mrb[3].mxu0 }
 0x119   :  { %v1380_v29 = vpop.f32.mrb[2].mxu1  ;;  %v1347_v30 = vadd.f32 %v1346_v28, %v1345_v27  ;;  %v1135_v27 = vld [vmem:[%s2661_s2 + $0xf0] sm:$0xff] }
 0x11a   :  { %v1381_v31 = vpop.f32.mrb[3].mxu1 }
 0x11b   :  { %v1382_v33 = vadd.f32 %v1381_v31, %v1380_v29  ;;  %v508_v34 = vadd.f32 %v1347_v30, %v438_v26  ;;  %v1134_v26 = vld [vmem:[%s2661_s2 + $0xe8] sm:$0xff] }
 0x11c   :  { %v1820_v28 = vpack.c.bf16 %v1135_v27, %v1134_v26 }
 0x11d   :  { %v578_v35 = vadd.f32 %v1382_v33, %v508_v34  ;;  %v1241_v34 = vld [vmem:[%s2661_s2 + $0xf8] ss:$0 sm:$0xff] }
 0x137   :  { %v1415_v36 = vpop.f32.mrb[4].mxu0 }
 0x138   :  { %v1416_v37 = vpop.f32.mrb[5].mxu0 }
 0x139   :  { %v1450_v38 = vpop.f32.mrb[4].mxu1  ;;  %v1417_v39 = vadd.f32 %v1416_v37, %v1415_v36 }
 0x13a   :  { %v1451_v40 = vpop.f32.mrb[5].mxu1 }
 0x13b   :  { %v1452_v42 = vadd.f32 %v1451_v40, %v1450_v38  ;;  %v648_v44 = vadd.f32 %v1417_v39, %v578_v35 }
 0x13d   :  { %v718_v45 = vadd.f32 %v1452_v42, %v648_v44 }
 0x147   :  { %v787_v48 = vpop.f32.mrb[6].mxu0 }
 0x148   :  { %v788_v49 = vadd.f32 %v787_v48, %v718_v45  ;;  %v1511_v50 = vpop.f32.mrb[7].mxu0 }
 0x14a   :  { %v791_v53 = vmax.f32 %v788_v49, 0.0 }
 0x14c   :  { %1525 = vmatmul.mubr.msk.f32.vlgmr.msra.gmra.mrb[6].mxu1 %vm803_vm2, %v791_v53 }
 0x14d   :  { %1794 = vmatpush3.bf16.msra.mxu1 %v1793_v51  ;;  %1539 = vmatprep.mubr.msk.f32.mxu1 %vm1856_vm0, %v1857_v4 }
 0x14e   :  { %1795 = vmatprep.subr.bf16.mxu1 %v1855_v62 }
 0x151   :  { %1797 = vmatpush3.bf16.msra.mxu1 %v1796_v55 }
 0x152   :  { %1798 = vmatprep.subr.bf16.mxu1 %v1855_v62 }
 0x155   :  { %1800 = vmatpush3.bf16.msra.mxu1 %v1799_v41 }
 0x156   :  { %1810 = vmatprep.subr.bf16.mxu1 %v1855_v62 }
 0x21f   :  { %v873_v1 = vpop.f32.mrb[6].mxu1 }
 0x220   :  { %v874_v2 = vadd.f32 %v1233_v0, %v873_v1  ;;  %v1526_v3 = vpop.f32.mrb[7].mxu1 }
 0x222   :  { %v877_v43 = vmax.f32 %v874_v2, 0.0 }
 0x224   :  { %1540 = vmatmul.mubr.msk.f32.vlgmr.msra.gmra.mrb[8].mxu1 %vm803_vm2, %v877_v43 }
 0x225   :  { %1565 = vmatprep.mubr.msk.f32.mxu1 %vm1856_vm0, %v1857_v4  ;;  %1812 = vmatpush3.bf16.msra.mxu1 %v1811_v9 }
 0x226   :  { %1813 = vmatprep.subr.bf16.mxu1 %v1855_v62 }
 0x229   :  { %1815 = vmatpush3.bf16.msra.mxu1 %v1814_v18 }
 0x2f7   :  { %v958_v12 = vpop.f32.mrb[8].mxu1 }
 0x2f8   :  { %v959_v13 = vadd.f32 %v1235_v11, %v958_v12  ;;  %v1541_v14 = vpop.f32.mrb[9].mxu1 }
 0x2fa   :  { %v962_v15 = vmax.f32 %v959_v13, 0.0 }
 0x2fc   :  { %1555 = vmatmul.mubr.msk.f32.vlgmr.msra.gmra.mrb[8].mxu0 %vm803_vm2, %v962_v15 }
 0x2fd   :  { %1576 = vmatprep.mubr.msk.f32.mxu0 %vm1856_vm0, %v1857_v4  ;;  %1818 = vmatpush3.bf16.msra.mxu0 %v1817_v21  ;;  %v1237_v4 = vld [vmem:[%s2661_s2 + $0xa8] ss:$0 sm:$0xff] }
 0x2fe   :  { %1819 = vmatprep.subr.bf16.mxu0 %v1855_v62  ;;  %v1239_v62 = vld [vmem:[%s2661_s2 + $0xd0] ss:$0 sm:$0xff] }
 0x301   :  { %1821 = vmatpush3.bf16.msra.mxu0 %v1820_v28 }
 0x3cf   :  { %v1043_v22 = vpop.f32.mrb[8].mxu0 }
 0x3d0   :  { %v1044_v23 = vadd.f32 %v1237_v4, %v1043_v22  ;;  %v1556_v24 = vpop.f32.mrb[9].mxu0 }
 0x3d2   :  { %v1047_v25 = vmax.f32 %v1044_v23, 0.0 }
 0x3d4   :  { %1566 = vmatmul.mubr.msk.f32.vlgmr.msra.gmra.mrb[10].mxu1 %vm1057_vm3, %v1047_v25 }
 0x4a7   :  { %v1127_v29 = vpop.f32.mrb[10].mxu1 }
 0x4a8   :  { %v1128_v30 = vadd.f32 %v1239_v62, %v1127_v29  ;;  %v1567_v31 = vpop.f32.mrb[11].mxu1 }
 0x4aa   :  { %v1131_v33 = vmax.f32 %v1128_v30, 0.0 }
 0x4ac   :  { %1577 = vmatmul.mubr.msk.f32.vlgmr.msra.gmra.mrb[10].mxu0 %vm1057_vm3, %v1131_v33 }
 0x57f   :  { %v1210_v35 = vpop.f32.mrb[10].mxu0 }
 0x580   :  { %v1211_v36 = vadd.f32 %v1241_v34, %v1210_v35  ;;  %v1578_v37 = vpop.f32.mrb[11].mxu0 }
 0x582   :  { %1215 = vst.msk [vmem:[#allocation2] sm:$0x3] %vm1214_vm4, %v1211_v36 }
 0x583   :  { %1841 = shalt.err (!%p1838_p4)
}
 0x584   :  { %s1842_s24 = scalar_lea.hbm %s2662_s3, 32 }
 0x585   :  { %p1843_p5 = scmp.ne.s32.totalorder %s2662_s3, %s1842_s24  ;;  %p1846_p6 = scmp.lt.u32.totalorder %s1842_s24, %s2662_s3 }
 0x587   :  { %p1848_p7 = pnand %p1846_p6, %p1843_p5 }
 0x589   :  { %1851 = shalt.err (!%p1848_p7)
}
 0x58a   :  { %1225 = dma.vmem_to_hbm [thread:$0]  %s1223_s20, 32, %s2662_s3, [#allocation3]  }
 0x58b   :  { %1852 = dma.done.wait [#allocation3], 32  }
 0x58c   :  { %1853 = vsyncadd [#allocation3], 4294967264 }
 0x58d   :  { %1229 = vsyncpa [#allocation3], 1 }

</bundles_post_ra>
